<compile_context>
chip_gen: v7x
topology: tpu7x:2x2x1
jax: 0.10.0
libtpu: 0.0.40
codegen_flags: <defaults>
</compile_context>

<pallas_src>
import functools

import jax
import jax.numpy as jnp
from jax.experimental import pallas as pl
from jax.experimental.pallas import tpu as pltpu


def _lm_crit_kernel(inp_ref, tgt_ref, mask_ref, num_ref, den_ref, *, n_rows):
    # inp_ref:  (TM, V)   native-dtype log-probs
    # tgt_ref:  (TM, 1)   int32 target token ids
    # mask_ref: (TM, 1)   mask (any float dtype)
    # num_ref / den_ref: (8, 128) f32 per-block partial outputs (lane-aligned)
    i = pl.program_id(0)
    tm = inp_ref.shape[0]

    x = inp_ref[...].astype(jnp.float32)           # cast in-kernel (v5e-safe)
    tgt = tgt_ref[...]                             # (TM, 1) int32
    m = mask_ref[...].astype(jnp.float32)          # (TM, 1)

    # Rows past the logical end (last partial block) must not contribute.
    row_ids = i * tm + jax.lax.broadcasted_iota(jnp.int32, (tm, 1), 0)
    valid = row_ids < n_rows

    # Gather along vocab via one-hot select + lane reduction (XLU).
    lane_ids = jax.lax.broadcasted_iota(jnp.int32, x.shape, 1)
    picked = jnp.sum(jnp.where(lane_ids == tgt, x, 0.0),
                     axis=1, keepdims=True)        # (TM, 1)

    m = jnp.where(valid, m, 0.0)
    picked = jnp.where(valid, picked, 0.0)         # kill garbage from padded rows

    num_val = jnp.sum(-picked * m)                 # scalar f32 partial
    den_val = jnp.sum(m)                           # scalar f32 partial

    num_ref[...] = jnp.broadcast_to(num_val, num_ref.shape)
    den_ref[...] = jnp.broadcast_to(den_val, den_ref.shape)


def language_model_criterion(inp, target, mask):
    """inp: (B, T, V) float log-probs; target: (B, T_full) int; mask: (B, T_full) float."""
    B, T, V = inp.shape
    target = target[:, :T]
    mask = mask[:, :T]

    N = B * T
    itemsize = jnp.dtype(inp.dtype).itemsize
    bytes_per_row = V * itemsize

    # Sublane alignment factor: 8 for f32, 16 for bf16, 32 for 8-bit dtypes.
    sub = 8 * max(1, 4 // itemsize)

    # Pick the row tile so one input block is ~4 MiB (2-8 MiB pipeline sweet spot),
    # capped so the double-buffered block fits every generation's VMEM (incl. v7x).
    target_block_bytes = 4 * 1024 * 1024
    tm = max(sub, (target_block_bytes // max(1, bytes_per_row)) // sub * sub)
    tm = min(tm, 4096)
    n_pad = -(-N // sub) * sub                     # round N up to sublane multiple
    tm = min(tm, n_pad)
    grid = pl.cdiv(N, tm)

    inp_f = inp.reshape(N, V)                      # native dtype -> no extra HBM copy
    tgt_f = target.reshape(N, 1).astype(jnp.int32)
    msk_f = mask.reshape(N, 1)

    kernel = functools.partial(_lm_crit_kernel, n_rows=N)

    # Double-buffered input block + small side buffers + headroom.
    vmem_limit = max(16 << 20, 2 * tm * bytes_per_row + (4 << 20))

    num_p, den_p = pl.pallas_call(
        kernel,
        out_shape=(
            jax.ShapeDtypeStruct((grid * 8, 128), jnp.float32),
            jax.ShapeDtypeStruct((grid * 8, 128), jnp.float32),
        ),
        grid_spec=pltpu.PrefetchScalarGridSpec(
            num_scalar_prefetch=0,
            grid=(grid,),
            in_specs=[
                pl.BlockSpec((tm, V), lambda i: (i, 0)),
                pl.BlockSpec((tm, 1), lambda i: (i, 0)),
                pl.BlockSpec((tm, 1), lambda i: (i, 0)),
            ],
            out_specs=[
                pl.BlockSpec((8, 128), lambda i: (i, 0)),
                pl.BlockSpec((8, 128), lambda i: (i, 0)),
            ],
        ),
        compiler_params=pltpu.CompilerParams(
            dimension_semantics=("parallel",),
            vmem_limit_bytes=int(vmem_limit),
        ),
    )(inp_f, tgt_f, msk_f)

    # Each grid step broadcast-filled its (8,128) tile; pick one element per block.
    num = jnp.sum(num_p[::8, 0])
    den = jnp.sum(den_p[::8, 0])
    return (num / den).astype(inp.dtype)


def _reference(inp, target, mask):
    B, T, V = inp.shape
    target = target[:, :T].reshape(-1)
    mask = mask[:, :T].reshape(-1).astype(jnp.float32)
    flat = inp.reshape(-1, V).astype(jnp.float32)
    picked = jnp.take_along_axis(flat, target[:, None].astype(jnp.int32), axis=1)[:, 0]
    return jnp.sum(-picked * mask) / jnp.sum(mask)


if __name__ == "__main__":
    key = jax.random.PRNGKey(0)
    k1, k2, k3 = jax.random.split(key, 3)

    B, T, T_full, V = 2, 8, 10, 32
    logits = jax.random.normal(k1, (B, T, V), dtype=jnp.float32)
    log_probs = jax.nn.log_softmax(logits, axis=-1)
    target = jax.random.randint(k2, (B, T_full), 0, V, dtype=jnp.int32)
    mask = (jax.random.uniform(k3, (B, T_full)) > 0.3).astype(jnp.float32)
    # ensure mask sum > 0
    mask = mask.at[0, 0].set(1.0)

    # f32 path
    out = jax.block_until_ready(language_model_criterion(log_probs, target, mask))
    ref = _reference(log_probs, target, mask)
    assert jnp.allclose(out, ref, rtol=1e-5, atol=1e-5), (out, ref)

    # native bf16 path (no wrapper upcast; cast happens inside the kernel)
    lp_bf16 = log_probs.astype(jnp.bfloat16)
    out_bf16 = jax.block_until_ready(language_model_criterion(lp_bf16, target, mask))
    ref_bf16 = _reference(lp_bf16, target, mask)
    assert jnp.allclose(out_bf16.astype(jnp.float32), ref_bf16, rtol=2e-2, atol=2e-2), (
        out_bf16, ref_bf16)

    print("KERNEL_OK")
</pallas_src>

<mosaic_0001>
module attributes {stable_mosaic.version = 11 : i64} {
  func.func @_lm_crit_kernel(%arg0: i32, %arg1: memref<16x32xf32, #tpu.memory_space<vmem>>, %arg2: memref<16x1xi32, #tpu.memory_space<vmem>>, %arg3: memref<16x1xf32, #tpu.memory_space<vmem>>, %arg4: memref<8x128xf32, #tpu.memory_space<vmem>>, %arg5: memref<8x128xf32, #tpu.memory_space<vmem>>) attributes {dimension_semantics = [#tpu.dimension_semantics<parallel>], iteration_bounds = array<i64: 1>, scalar_prefetch = 0 : i64, scratch_operands = 0 : i64, tpu.core_type = #tpu.core_type<tc>, window_params = [{transform_indices = @transform_0, window_bounds = array<i64: 16, 32>}, {transform_indices = @transform_1, window_bounds = array<i64: 16, 1>}, {transform_indices = @transform_2, window_bounds = array<i64: 16, 1>}, {transform_indices = @transform_3, window_bounds = array<i64: 8, 128>}, {transform_indices = @transform_4, window_bounds = array<i64: 8, 128>}]} {
    %c0 = arith.constant 0 : index
    %c0_0 = arith.constant 0 : index
    %0 = vector.load %arg1[%c0, %c0_0] : memref<16x32xf32, #tpu.memory_space<vmem>>, vector<16x32xf32>
    %c0_1 = arith.constant 0 : index
    %c0_2 = arith.constant 0 : index
    %1 = vector.load %arg2[%c0_1, %c0_2] : memref<16x1xi32, #tpu.memory_space<vmem>>, vector<16x1xi32>
    %c0_3 = arith.constant 0 : index
    %c0_4 = arith.constant 0 : index
    %2 = vector.load %arg3[%c0_3, %c0_4] : memref<16x1xf32, #tpu.memory_space<vmem>>, vector<16x1xf32>
    %c16_i32 = arith.constant 16 : i32
    %3 = arith.muli %arg0, %c16_i32 : i32
    %4 = tpu.iota {dimensions = array<i32: 0>} : vector<16x1xi32>
    %5 = vector.broadcast %3 : i32 to vector<16x1xi32>
    %6 = arith.addi %5, %4 : vector<16x1xi32>
    %c16_i32_5 = arith.constant 16 : i32
    %7 = vector.broadcast %c16_i32_5 : i32 to vector<16x1xi32>
    %8 = arith.cmpi slt, %6, %7 : vector<16x1xi32>
    %9 = tpu.iota {dimensions = array<i32: 1>} : vector<16x32xi32>
    %10 = vector.broadcast %1 : vector<16x1xi32> to vector<16x32xi32>
    %11 = arith.cmpi eq, %9, %10 : vector<16x32xi32>
    %cst = arith.constant 0.000000e+00 : f32
    %12 = vector.broadcast %cst : f32 to vector<16x32xf32>
    %13 = arith.select %11, %0, %12 : vector<16x32xi1>, vector<16x32xf32>
    %cst_6 = arith.constant dense<0.000000e+00> : vector<16xf32>
    %14 = vector.multi_reduction <add>, %13, %cst_6 [1] : vector<16x32xf32> to vector<16xf32>
    %15 = vector.shape_cast %14 : vector<16xf32> to vector<16x1xf32>
    %cst_7 = arith.constant 0.000000e+00 : f32
    %16 = vector.broadcast %cst_7 : f32 to vector<16x1xf32>
    %17 = arith.select %8, %2, %16 : vector<16x1xi1>, vector<16x1xf32>
    %cst_8 = arith.constant 0.000000e+00 : f32
    %18 = vector.broadcast %cst_8 : f32 to vector<16x1xf32>
    %19 = arith.select %8, %15, %18 : vector<16x1xi1>, vector<16x1xf32>
    %cst_9 = arith.constant 0.000000e+00 : f32
    %20 = vector.broadcast %cst_9 : f32 to vector<16x1xf32>
    %21 = arith.subf %20, %19 : vector<16x1xf32>
    %22 = arith.mulf %21, %17 : vector<16x1xf32>
    %23 = vector.shape_cast %22 : vector<16x1xf32> to vector<1x16x1xf32>
    %cst_10 = arith.constant dense<0.000000e+00> : vector<1xf32>
    %24 = vector.multi_reduction <add>, %23, %cst_10 [1, 2] : vector<1x16x1xf32> to vector<1xf32>
    %25 = vector.shape_cast %24 : vector<1xf32> to vector<1x1x1xf32>
    %26 = vector.extract %25[0, 0, 0] : f32 from vector<1x1x1xf32>
    %27 = vector.shape_cast %17 : vector<16x1xf32> to vector<1x16x1xf32>
    %cst_11 = arith.constant dense<0.000000e+00> : vector<1xf32>
    %28 = vector.multi_reduction <add>, %27, %cst_11 [1, 2] : vector<1x16x1xf32> to vector<1xf32>
    %29 = vector.shape_cast %28 : vector<1xf32> to vector<1x1x1xf32>
    %30 = vector.extract %29[0, 0, 0] : f32 from vector<1x1x1xf32>
    %31 = vector.broadcast %26 : f32 to vector<8x128xf32>
    %c0_12 = arith.constant 0 : index
    %c0_13 = arith.constant 0 : index
    %32 = vector.load %arg4[%c0_12, %c0_13] : memref<8x128xf32, #tpu.memory_space<vmem>>, vector<8x128xf32>
    tpu.vector_store %arg4[%c0_12, %c0_13], %31 {strides = array<i32>} : memref<8x128xf32, #tpu.memory_space<vmem>>, vector<8x128xf32>,
    %33 = vector.broadcast %30 : f32 to vector<8x128xf32>
    %c0_14 = arith.constant 0 : index
    %c0_15 = arith.constant 0 : index
    %34 = vector.load %arg5[%c0_14, %c0_15] : memref<8x128xf32, #tpu.memory_space<vmem>>, vector<8x128xf32>
    tpu.vector_store %arg5[%c0_14, %c0_15], %33 {strides = array<i32>} : memref<8x128xf32, #tpu.memory_space<vmem>>, vector<8x128xf32>,
    return
  }
  func.func @transform_0(%arg0: i32) -> (i32, i32) {
    %c0_i32 = arith.constant 0 : i32
    %c0_i32_0 = arith.constant 0 : i32
    return %arg0, %c0_i32 : i32, i32
  }
  func.func @transform_1(%arg0: i32) -> (i32, i32) {
    %c0_i32 = arith.constant 0 : i32
    %c0_i32_0 = arith.constant 0 : i32
    return %arg0, %c0_i32 : i32, i32
  }
  func.func @transform_2(%arg0: i32) -> (i32, i32) {
    %c0_i32 = arith.constant 0 : i32
    %c0_i32_0 = arith.constant 0 : i32
    return %arg0, %c0_i32 : i32, i32
  }
  func.func @transform_3(%arg0: i32) -> (i32, i32) {
    %c0_i32 = arith.constant 0 : i32
    %c0_i32_0 = arith.constant 0 : i32
    return %arg0, %c0_i32 : i32, i32
  }
  func.func @transform_4(%arg0: i32) -> (i32, i32) {
    %c0_i32 = arith.constant 0 : i32
    %c0_i32_0 = arith.constant 0 : i32
    return %arg0, %c0_i32 : i32, i32
  }
}

</mosaic_0001>

<bundles_post_ra>
// kernel: tpu_custom_call.1
= control target key start
LH: loop header
LB: loop body
LE: loop exit
PB: predicated region body
PF: predicated region fallthrough
CT: control target
= control target key end

     0   :  { %10 = vsyncpa [#allocation3], 0  ;;  %s250_s0 = inlined_call_operand.vmem [shape: f32[16,32], index: 0, kind: input, shape index: {}]   ;;  %s251_s1 = inlined_call_operand.vmem [shape: s32[16,1], index: 1, kind: input, shape index: {}]   ;;  %s252_s2 = inlined_call_operand.vmem [shape: f32[16,1], index: 2, kind: input, shape index: {}]   ;;  %s253_s3 = inlined_call_operand.hbm [shape: f32[8,128], index: 3, kind: output, shape index: {0}]   ;;  %s254_s4 = inlined_call_operand.hbm [shape: f32[8,128], index: 4, kind: output, shape index: {1}]  }
   0x1   :  { %v20_v0 = vld [vmem:[%s251_s1] sm:$0xff] }
   0x2   :  { %11 = vsyncpa [#allocation5], 0  ;;  %v173_v1 = vmov 0   ;;  %v21_v2 = vld [vmem:[%s251_s1 + $0x8] sm:$0xff]  ;;  %v33_v3 = vlaneseq  ;;  %v18_v5 = vld [vmem:[%s250_s0] sm:$0xff]  ;;  %vm45_vm0 = vcmask 261120  }
   0x3   :  { %124 = vset.pattern.permute.xlu0 %v173_v1  ;;  %v19_v9 = vld [vmem:[%s250_s0 + $0x8] sm:$0xff]  ;;  %v22_v13 = vld [vmem:[%s252_s2] sm:$0xff]  ;;  %vm60_vm3 = vcmask 7168   ;;  %s174_s0 = smov [#allocation2]   ;;  %s175_s26 = smov [#allocation4]  }
   0x4   :  { %36 = vperm.xlu0 %124, %v20_v0   ;;  %v34_v4 = vand.u32 127, %v33_v3  ;;  %v23_v14 = vld [vmem:[%s252_s2 + $0x8] sm:$0xff]  ;;  %v73_v15 = vsel %vm60_vm3, %v22_v13, 0.0  ;;  %s95_s2 = sshll.u32 %s174_s0, 4  ;;  %s105_s27 = sshll.u32 %s175_s26, 4  ;;  %s96_s2 = int_to_ptr.vmem [resolvable:$true] %s95_s2  ;;  %s219_s27 = int_to_ptr.vmem [resolvable:$true] %s105_s27 }
   0x5   :  { %v74_v16 = vsel %vm60_vm3, %v23_v14, 0.0  ;;  %s125_s30 = scalar_lea.vmem %s96_s2, 128  ;;  %p130_p1 = scmp.lt.s32.totalorder %s96_s2, %s96_s2 }
   0x6   :  { %v75_v17 = vadd.f32 %v74_v16, %v73_v15  ;;  %p126_p0 = scmp.ne.s32.totalorder %s96_s2, %s125_s30  ;;  %p131_p2 = scmp.lt.s32.totalorder %s125_s30, %s125_s30 }
   0x8   :  { %39 = vperm.xlu0 %124, %v21_v2   ;;  %p132_p3 = por %p131_p2, %p130_p1 }
   0xa   :  { %p133_p4 = pnand %p132_p3, %p126_p0 }
  0x83   :  { %v37_v6 = vpop.permute.xlu0 %36 }
  0x84   :  { %vm41_vm1 = vcmp.eq.s32.totalorder %v34_v4, %v37_v6 }
  0x85   :  { %v43_v7 = vsel %vm41_vm1, %v18_v5, 0.0 }
  0x86   :  { %v46_v8 = vsel %vm45_vm0, %v43_v7, 0.0 }
  0x87   :  { %v40_v10 = vpop.permute.xlu0 %39  ;;  %47 = vadd.xlane.f32.xlu1 %v46_v8 }
  0x88   :  { %vm42_vm2 = vcmp.eq.s32.totalorder %v34_v4, %v40_v10 }
  0x89   :  { %v44_v11 = vsel %vm42_vm2, %v19_v9, 0.0 }
  0x8a   :  { %v49_v12 = vsel %vm45_vm0, %v44_v11, 0.0 }
  0x8b   :  { %50 = vadd.xlane.f32.xlu1 %v49_v12 }
  0x8f   :  { %76 = vadd.xlane.f32.xlu1 %v75_v17 }
 0x114   :  { %v48_v18 = vpop.xlane.xlu1 %47 }
 0x115   :  { %v56_v19 = vsub.f32 0.0, %v48_v18 }
 0x117   :  { %v58_v21 = vmul.f32 %v56_v19, %v22_v13 }
 0x118   :  { %v51_v20 = vpop.xlane.xlu1 %50 }
 0x119   :  { %v57_v22 = vsub.f32 0.0, %v51_v20  ;;  %v61_v24 = vsel %vm60_vm3, %v58_v21, 0.0 }
 0x11b   :  { %v59_v23 = vmul.f32 %v57_v22, %v23_v14 }
 0x11c   :  { %v77_v27 = vpop.xlane.xlu1 %76 }
 0x11d   :  { %v62_v25 = vsel %vm60_vm3, %v59_v23, 0.0  ;;  %v78_v28 = vrot.slane %v77_v27, 4 }
 0x11e   :  { %v63_v26 = vadd.f32 %v62_v25, %v61_v24 }
 0x11f   :  { %v79_v29 = vadd.f32 %v78_v28, %v77_v27 }
 0x120   :  { %64 = vadd.xlane.f32.xlu0 %v63_v26 }
 0x121   :  { %v80_v30 = vrot.slane %v79_v29, 2 }
 0x123   :  { %v81_v34 = vadd.f32 %v80_v30, %v79_v29 }
 0x125   :  { %v82_v37 = vrot.slane %v81_v34, 1 }
 0x127   :  { %v83_v40 = vadd.f32 %v82_v37, %v81_v34 }
 0x1ad   :  { %v65_v31 = vpop.xlane.xlu0 %64 }
 0x1ae   :  { %v66_v32 = vrot.slane %v65_v31, 4 }
 0x1b0   :  { %v67_v33 = vadd.f32 %v66_v32, %v65_v31 }
 0x1b2   :  { %v68_v35 = vrot.slane %v67_v33, 2 }
 0x1b4   :  { %v69_v36 = vadd.f32 %v68_v35, %v67_v33 }
 0x1b6   :  { %v70_v38 = vrot.slane %v69_v36, 1 }
 0x1b8   :  { %v71_v39 = vadd.f32 %v70_v38, %v69_v36 }
 0x1ba   :  { %117 = vpush %v71_v39 }
 0x1bb   :  { %119 = vpush %v83_v40 }
 0x1eb   :  { %s118_s28 = spop %117 }
 0x1ec   :  { %v85_v41 = vstv %s118_s28  ;;  %s120_s29 = spop %119 }
 0x1ed   :  { %86 = vst [vmem:[#allocation2] sm:$0xff] %v85_v41  ;;  %v87_v42 = vstv %s120_s29 }
 0x1ee   :  { %88 = vst [vmem:[#allocation4] sm:$0xff] %v87_v42 }
 0x1ef   :  { %136 = shalt.err (!%p133_p4)
}
 0x1f0   :  { %s137_s7 = scalar_lea.hbm %s253_s3, 128 }
 0x1f1   :  { %p138_p5 = scmp.ne.s32.totalorder %s253_s3, %s137_s7  ;;  %p141_p6 = scmp.lt.u32.totalorder %s137_s7, %s253_s3 }
 0x1f3   :  { %p143_p7 = pnand %p141_p6, %p138_p5 }
 0x1f5   :  { %146 = shalt.err (!%p143_p7)
}
 0x1f6   :  { %98 = dma.vmem_to_hbm [thread:$0]  %s96_s2, 128, %s253_s3, [#allocation3]  }
 0x1f7   :  { %s147_s14 = scalar_lea.vmem %s219_s27, 128  ;;  %p152_p9 = scmp.lt.s32.totalorder %s219_s27, %s219_s27 }
 0x1f8   :  { %p148_p8 = scmp.ne.s32.totalorder %s219_s27, %s147_s14  ;;  %p153_p10 = scmp.lt.s32.totalorder %s147_s14, %s147_s14 }
 0x1fa   :  { %p154_p11 = por %p153_p10, %p152_p9 }
 0x1fc   :  { %p155_p12 = pnand %p154_p11, %p148_p8 }
 0x1fe   :  { %158 = shalt.err (!%p155_p12)
}
 0x1ff   :  { %s159_s17 = scalar_lea.hbm %s254_s4, 128 }
 0x200   :  { %p160_p13 = scmp.ne.s32.totalorder %s254_s4, %s159_s17  ;;  %p163_p0 = scmp.lt.u32.totalorder %s159_s17, %s254_s4 }
 0x202   :  { %p165_p1 = pnand %p163_p0, %p160_p13 }
 0x204   :  { %168 = shalt.err (!%p165_p1)
}
 0x205   :  { %108 = dma.vmem_to_hbm [thread:$0]  %s219_s27, 128, %s254_s4, [#allocation5]  }
 0x206   :  { %169 = dma.done.wait [#allocation3], 128  }
 0x207   :  { %170 = vsyncadd [#allocation3], 4294967168 }
 0x208   :  { %171 = dma.done.wait [#allocation5], 128  }
 0x209   :  { %172 = vsyncadd [#allocation5], 4294967168 }
 0x20a   :  { %115 = vsyncpa [#allocation3], 1 }
 0x20b   :  { %116 = vsyncpa [#allocation5], 1 }

</bundles_post_ra>
